<compile_context>
chip_gen: v7x
topology: tpu7x:2x2x1
jax: 0.10.0
libtpu: 0.0.40
codegen_flags: <defaults>
</compile_context>

<pallas_src>
import functools
from typing import NamedTuple

import jax
import jax.numpy as jnp
from jax.experimental import pallas as pl
from jax.experimental.pallas import tpu as pltpu


def _round_up(x, m):
    return (x + m - 1) // m * m


def _default_elementwise_dtype():
    """bf16 bias-add/tanh on chips with a bf16 VPU/EUP (v6e/v7x), f32 otherwise."""
    try:
        kind = jax.devices()[0].device_kind.lower()
    except Exception:
        return jnp.float32
    if ("v6" in kind) or ("v7" in kind):
        return jnp.bfloat16
    return jnp.float32


class MLPConfig(NamedTuple):
    n_layers: int
    ob_dim: int
    hidden: int
    ac_dim: int
    out_pad: int
    elementwise_dtype: type


def prepare_params(params, weights_dtype=jnp.bfloat16, elementwise_dtype=None):
    """One-time pack / pad / cast of mean_net parameters (call once per update).

    params = {"trunk": [(W (in,out), b (out,)), ...],
              "mean_head": (W (hidden, ac_dim), b (ac_dim,)),
              "logstd_head": (W (hidden, ac_dim), b (ac_dim,))}
    Weights are stored (in_features, out_features), i.e. PyTorch W.T.
    """
    if elementwise_dtype is None:
        elementwise_dtype = _default_elementwise_dtype()

    trunk = params["trunk"]
    w_mean, b_mean = params["mean_head"]
    w_log, b_log = params["logstd_head"]

    n_layers = len(trunk)
    ob_dim = trunk[0][0].shape[0]
    hidden = trunk[0][0].shape[1]
    ac_dim = w_mean.shape[1]

    f32 = jnp.float32
    H = _round_up(hidden, 128)          # lane-pad hidden width (zero-pad is exact)
    OUT = _round_up(2 * ac_dim, 128)    # lane-dense fused-head output slab

    flat = []
    in_dim, in_pad = ob_dim, ob_dim     # first layer keeps the true ob_dim K (no HBM pad)
    for (w, b) in trunk:
        out_dim = w.shape[1]
        wp = jnp.zeros((in_pad, H), f32).at[:in_dim, :out_dim].set(w.astype(f32))
        bp = jnp.zeros((1, H), f32).at[0, :out_dim].set(b.astype(f32))
        flat += [wp.astype(weights_dtype), bp.astype(elementwise_dtype)]
        in_dim, in_pad = out_dim, H

    # Fused heads, kept in f32: mean columns then log_std columns.
    wh = jnp.zeros((H, OUT), f32)
    wh = wh.at[:hidden, :ac_dim].set(w_mean.astype(f32))
    wh = wh.at[:hidden, ac_dim:2 * ac_dim].set(w_log.astype(f32))
    bh = jnp.zeros((1, OUT), f32)
    bh = bh.at[0, :ac_dim].set(b_mean.astype(f32))
    bh = bh.at[0, ac_dim:2 * ac_dim].set(b_log.astype(f32))
    flat += [wh, bh]

    cfg = MLPConfig(n_layers=n_layers, ob_dim=ob_dim, hidden=hidden,
                    ac_dim=ac_dim, out_pad=OUT, elementwise_dtype=elementwise_dtype)
    return tuple(flat), cfg


def _mlp_kernel(n_layers, compute_dtype, obs_ref, *refs):
    """refs = [W0, b0, ..., W_{L-1}, b_{L-1}, W_head (f32), b_head (f32), out_ref]."""
    out_ref = refs[-1]
    prm = refs[:-1]

    x = obs_ref[...]                                      # bf16 obs tile, true ob_dim lanes
    for i in range(n_layers):
        w = prm[2 * i][...]
        b = prm[2 * i + 1][...]
        y = jnp.dot(x.astype(w.dtype), w, preferred_element_type=jnp.float32)
        # Fused bias-add + tanh; bf16 on v6e/v7x (bf16 VPU/EUP), f32 on v5e.
        x = jnp.tanh(y.astype(compute_dtype) + b)

    wh = prm[2 * n_layers][...]                           # f32 fused (mean | log_std) head
    bh = prm[2 * n_layers + 1][...]
    out = jnp.dot(x.astype(jnp.float32), wh, preferred_element_type=jnp.float32) + bh
    out_ref[...] = out.astype(out_ref.dtype)


@functools.partial(jax.jit, static_argnames=("cfg", "batch_tile"))
def mlp_sac_forward(obs, flat_params, cfg, batch_tile=1024):
    """Returns (mean, log_std) = mean_net(obs) using the fused Pallas kernel.

    flat_params, cfg come from prepare_params() (run once per parameter update).
    Pass obs already in bfloat16 to avoid the wrapper-side cast pass.
    """
    n_layers, ob_dim, hidden, ac_dim, OUT, compute_dtype = cfg
    del n_layers  # bound into the kernel via functools.partial below
    B = obs.shape[0]
    f32 = jnp.float32
    H = _round_up(hidden, 128)

    # Batch tile: large (amortize ~0.35us/step), but capped so the grid has
    # >= 2 steps when B allows -> both v7x TensorCores stay busy.
    TB = min(batch_tile, max(8, _round_up(pl.cdiv(B, 2), 8)))
    B_pad = _round_up(B, TB)

    # Stream obs in bf16 with NO 128-lane HBM padding; only batch-pad if needed.
    obs_c = obs.astype(jnp.bfloat16)
    if B_pad != B:
        obs_c = jnp.zeros((B_pad, ob_dim), jnp.bfloat16).at[:B].set(obs_c)

    # BlockSpecs: obs / out stream over the batch grid axis; every parameter
    # block is the full array, maps to block (0,0) and is single-buffered.
    obs_spec = pl.BlockSpec((TB, ob_dim), lambda i: (i, 0))
    out_spec = pl.BlockSpec((TB, OUT), lambda i: (i, 0))
    param_specs = [
        pl.BlockSpec(p.shape, lambda i: (0, 0), pipeline_mode=pl.Buffered(1))
        for p in flat_params
    ]

    # Explicit scoped-VMEM budget: resident params (1x, Buffered(1)) +
    # double-buffered obs/out tiles + a few activation temps, ~25% headroom.
    param_bytes = sum(int(p.size) * p.dtype.itemsize for p in flat_params)
    stream_bytes = 2 * TB * ob_dim * 2 + 2 * TB * OUT * 4
    act_bytes = 4 * TB * max(H, OUT) * 4
    vmem_limit = int(1.25 * (param_bytes + stream_bytes + act_bytes)) + (1 << 20)
    try:
        vmem_cap = int(pltpu.get_tpu_info().vmem_capacity_bytes)
    except Exception:
        vmem_cap = 64 * 1024 * 1024        # v7x per-TC physical VMEM (smallest)
    vmem_limit = min(max(vmem_limit, 4 * 1024 * 1024), int(0.9 * vmem_cap))

    out = pl.pallas_call(
        functools.partial(_mlp_kernel, cfg.n_layers, compute_dtype),
        out_shape=jax.ShapeDtypeStruct((B_pad, OUT), f32),
        grid=(B_pad // TB,),
        in_specs=[obs_spec] + param_specs,
        out_specs=out_spec,
        compiler_params=pltpu.CompilerParams(
            dimension_semantics=("parallel",),
            vmem_limit_bytes=vmem_limit),
    )(obs_c, *flat_params)

    mean = out[:B, :ac_dim]
    log_std = out[:B, ac_dim:2 * ac_dim]
    # TODO(synk): if ptu.build_sac_mlp clamps / tanh-squashes log_std internally,
    # mirror that transform here to match the PyTorch reference exactly.
    return mean, log_std


def _ref_forward(obs, params):
    """Pure-JAX f32 reference of mean_net(obs)."""
    x = obs
    for (w, b) in params["trunk"]:
        x = jnp.tanh(x @ w + b)
    wm, bm = params["mean_head"]
    wl, bl = params["logstd_head"]
    return x @ wm + bm, x @ wl + bl


if __name__ == "__main__":
    key = jax.random.PRNGKey(0)
    B, ob_dim, ac_dim, n_layers, hidden = 2, 17, 6, 2, 64

    def linear_init(k, fan_in, fan_out):
        k1, k2 = jax.random.split(k)
        bound = 1.0 / (fan_in ** 0.5)
        w = jax.random.uniform(k1, (fan_in, fan_out), jnp.float32, -bound, bound)
        b = jax.random.uniform(k2, (fan_out,), jnp.float32, -bound, bound)
        return w, b

    keys = jax.random.split(key, n_layers + 3)
    trunk = []
    in_dim = ob_dim
    for i in range(n_layers):
        trunk.append(linear_init(keys[i], in_dim, hidden))
        in_dim = hidden
    params = {
        "trunk": trunk,
        "mean_head": linear_init(keys[n_layers], hidden, ac_dim),
        "logstd_head": linear_init(keys[n_layers + 1], hidden, ac_dim),
    }
    obs = jax.random.normal(keys[n_layers + 2], (B, ob_dim), jnp.float32)

    flat_params, cfg = prepare_params(params)          # once per parameter update
    mean, log_std = jax.block_until_ready(mlp_sac_forward(obs, flat_params, cfg))

    r_mean, r_log = _ref_forward(obs, params)
    assert mean.shape == (B, ac_dim) and log_std.shape == (B, ac_dim)
    assert jnp.allclose(mean, r_mean, atol=5e-2, rtol=5e-2), "mean mismatch"
    assert jnp.allclose(log_std, r_log, atol=5e-2, rtol=5e-2), "log_std mismatch"
    print("KERNEL_OK")
</pallas_src>

<mosaic_0001>
module attributes {stable_mosaic.version = 11 : i64} {
  func.func @_mlp_kernel(%arg0: i32, %arg1: memref<8x17xbf16, #tpu.memory_space<vmem>>, %arg2: memref<17x128xbf16, #tpu.memory_space<vmem>>, %arg3: memref<1x128xf32, #tpu.memory_space<vmem>>, %arg4: memref<128x128xbf16, #tpu.memory_space<vmem>>, %arg5: memref<1x128xf32, #tpu.memory_space<vmem>>, %arg6: memref<128x128xf32, #tpu.memory_space<vmem>>, %arg7: memref<1x128xf32, #tpu.memory_space<vmem>>, %arg8: memref<8x128xf32, #tpu.memory_space<vmem>>) attributes {dimension_semantics = [#tpu.dimension_semantics<parallel>], iteration_bounds = array<i64: 1>, scalar_prefetch = 0 : i64, scratch_operands = 0 : i64, tpu.core_type = #tpu.core_type<tc>, window_params = [{transform_indices = @transform_0, window_bounds = array<i64: 8, 17>}, {pipeline_mode = #tpu.pipeline_mode<synchronous>, transform_indices = @transform_1, window_bounds = array<i64: 17, 128>}, {pipeline_mode = #tpu.pipeline_mode<synchronous>, transform_indices = @transform_2, window_bounds = array<i64: 1, 128>}, {pipeline_mode = #tpu.pipeline_mode<synchronous>, transform_indices = @transform_3, window_bounds = array<i64: 128, 128>}, {pipeline_mode = #tpu.pipeline_mode<synchronous>, transform_indices = @transform_4, window_bounds = array<i64: 1, 128>}, {pipeline_mode = #tpu.pipeline_mode<synchronous>, transform_indices = @transform_5, window_bounds = array<i64: 128, 128>}, {pipeline_mode = #tpu.pipeline_mode<synchronous>, transform_indices = @transform_6, window_bounds = array<i64: 1, 128>}, {transform_indices = @transform_7, window_bounds = array<i64: 8, 128>}]} {
    %c0 = arith.constant 0 : index
    %c0_0 = arith.constant 0 : index
    %0 = vector.load %arg1[%c0, %c0_0] : memref<8x17xbf16, #tpu.memory_space<vmem>>, vector<8x17xbf16>
    %c0_1 = arith.constant 0 : index
    %c0_2 = arith.constant 0 : index
    %1 = vector.load %arg2[%c0_1, %c0_2] : memref<17x128xbf16, #tpu.memory_space<vmem>>, vector<17x128xbf16>
    %c0_3 = arith.constant 0 : index
    %c0_4 = arith.constant 0 : index
    %2 = vector.load %arg3[%c0_3, %c0_4] : memref<1x128xf32, #tpu.memory_space<vmem>>, vector<1x128xf32>
    %cst = arith.constant dense<0.000000e+00> : vector<8x128xf32>
    %3 = tpu.matmul %0, %1, %cst {dimension_numbers = #tpu.dot_dimension_numbers<[1], [0], [0], [1], [0, 0, 1, 1], [], []>} : vector<8x17xbf16>, vector<17x128xbf16>, vector<8x128xf32> -> vector<8x128xf32>
    %4 = vector.broadcast %2 : vector<1x128xf32> to vector<8x128xf32>
    %5 = arith.addf %3, %4 : vector<8x128xf32>
    %6 = math.tanh %5 : vector<8x128xf32>
    %c0_5 = arith.constant 0 : index
    %c0_6 = arith.constant 0 : index
    %7 = vector.load %arg4[%c0_5, %c0_6] : memref<128x128xbf16, #tpu.memory_space<vmem>>, vector<128x128xbf16>
    %c0_7 = arith.constant 0 : index
    %c0_8 = arith.constant 0 : index
    %8 = vector.load %arg5[%c0_7, %c0_8] : memref<1x128xf32, #tpu.memory_space<vmem>>, vector<1x128xf32>
    %9 = arith.truncf %6 : vector<8x128xf32> to vector<8x128xbf16>
    %cst_9 = arith.constant dense<0.000000e+00> : vector<8x128xf32>
    %10 = tpu.matmul %9, %7, %cst_9 {dimension_numbers = #tpu.dot_dimension_numbers<[1], [0], [0], [1], [0, 0, 1, 1], [], []>} : vector<8x128xbf16>, vector<128x128xbf16>, vector<8x128xf32> -> vector<8x128xf32>
    %11 = vector.broadcast %8 : vector<1x128xf32> to vector<8x128xf32>
    %12 = arith.addf %10, %11 : vector<8x128xf32>
    %13 = math.tanh %12 : vector<8x128xf32>
    %c0_10 = arith.constant 0 : index
    %c0_11 = arith.constant 0 : index
    %14 = vector.load %arg6[%c0_10, %c0_11] : memref<128x128xf32, #tpu.memory_space<vmem>>, vector<128x128xf32>
    %c0_12 = arith.constant 0 : index
    %c0_13 = arith.constant 0 : index
    %15 = vector.load %arg7[%c0_12, %c0_13] : memref<1x128xf32, #tpu.memory_space<vmem>>, vector<1x128xf32>
    %cst_14 = arith.constant dense<0.000000e+00> : vector<8x128xf32>
    %16 = tpu.matmul %13, %14, %cst_14 {dimension_numbers = #tpu.dot_dimension_numbers<[1], [0], [0], [1], [0, 0, 1, 1], [], []>} : vector<8x128xf32>, vector<128x128xf32>, vector<8x128xf32> -> vector<8x128xf32>
    %17 = vector.broadcast %15 : vector<1x128xf32> to vector<8x128xf32>
    %18 = arith.addf %16, %17 : vector<8x128xf32>
    %c0_15 = arith.constant 0 : index
    %c0_16 = arith.constant 0 : index
    %19 = vector.load %arg8[%c0_15, %c0_16] : memref<8x128xf32, #tpu.memory_space<vmem>>, vector<8x128xf32>
    tpu.vector_store %arg8[%c0_15, %c0_16], %18 {strides = array<i32>} : memref<8x128xf32, #tpu.memory_space<vmem>>, vector<8x128xf32>,
    return
  }
  func.func @transform_0(%arg0: i32) -> (i32, i32) {
    %c0_i32 = arith.constant 0 : i32
    %c0_i32_0 = arith.constant 0 : i32
    return %arg0, %c0_i32 : i32, i32
  }
  func.func @transform_1(%arg0: i32) -> (i32, i32) {
    %c0_i32 = arith.constant 0 : i32
    %c0_i32_0 = arith.constant 0 : i32
    %c0_i32_1 = arith.constant 0 : i32
    return %c0_i32, %c0_i32_0 : i32, i32
  }
  func.func @transform_2(%arg0: i32) -> (i32, i32) {
    %c0_i32 = arith.constant 0 : i32
    %c0_i32_0 = arith.constant 0 : i32
    %c0_i32_1 = arith.constant 0 : i32
    return %c0_i32, %c0_i32_0 : i32, i32
  }
  func.func @transform_3(%arg0: i32) -> (i32, i32) {
    %c0_i32 = arith.constant 0 : i32
    %c0_i32_0 = arith.constant 0 : i32
    %c0_i32_1 = arith.constant 0 : i32
    return %c0_i32, %c0_i32_0 : i32, i32
  }
  func.func @transform_4(%arg0: i32) -> (i32, i32) {
    %c0_i32 = arith.constant 0 : i32
    %c0_i32_0 = arith.constant 0 : i32
    %c0_i32_1 = arith.constant 0 : i32
    return %c0_i32, %c0_i32_0 : i32, i32
  }
  func.func @transform_5(%arg0: i32) -> (i32, i32) {
    %c0_i32 = arith.constant 0 : i32
    %c0_i32_0 = arith.constant 0 : i32
    %c0_i32_1 = arith.constant 0 : i32
    return %c0_i32, %c0_i32_0 : i32, i32
  }
  func.func @transform_6(%arg0: i32) -> (i32, i32) {
    %c0_i32 = arith.constant 0 : i32
    %c0_i32_0 = arith.constant 0 : i32
    %c0_i32_1 = arith.constant 0 : i32
    return %c0_i32, %c0_i32_0 : i32, i32
  }
  func.func @transform_7(%arg0: i32) -> (i32, i32) {
    %c0_i32 = arith.constant 0 : i32
    %c0_i32_0 = arith.constant 0 : i32
    return %arg0, %c0_i32 : i32, i32
  }
}

</mosaic_0001>

<bundles_post_ra>
// kernel: mlp_sac_forward.1
= control target key start
LH: loop header
LB: loop body
LE: loop exit
PB: predicated region body
PF: predicated region fallthrough
CT: control target
= control target key end

     0   :  { %12 = vsyncpa [#allocation3], 0  ;;  %s639_s0 = inlined_call_operand.vmem [shape: bf16[8,17], index: 0, kind: input, shape index: {}]   ;;  %s640_s1 = inlined_call_operand.vmem [shape: bf16[17,128], index: 1, kind: input, shape index: {}]   ;;  %s641_s2 = inlined_call_operand.vmem [shape: f32[1,128], index: 2, kind: input, shape index: {}]   ;;  %s642_s3 = inlined_call_operand.hbm [shape: bf16[128,128], index: 3, kind: input, shape index: {}]   ;;  %s643_s4 = inlined_call_operand.vmem [shape: f32[1,128], index: 4, kind: input, shape index: {}]   ;;  %s644_s5 = inlined_call_operand.hbm [shape: f32[128,128], index: 5, kind: input, shape index: {}]   ;;  %s645_s6 = inlined_call_operand.vmem [shape: f32[1,128], index: 6, kind: input, shape index: {}]   ;;  %s646_s7 = inlined_call_operand.vmem [shape: f32[8,128], index: 7, kind: output, shape index: {}]  }
   0x1   :  { %13 = vsyncpa [#allocation5], 0  ;;  %s541_s24 = smov [#allocation2]   ;;  %s493_s28 = scalar_lea.hbm %s642_s3, 1024 }
   0x2   :  { %s25_s25 = sshll.u32 %s541_s24, 4  ;;  %p494_p0 = scmp.ne.s32.totalorder %s642_s3, %s493_s28  ;;  %s26_s25 = int_to_ptr.vmem [resolvable:$true] %s25_s25 }
   0x3   :  { %p497_p1 = scmp.lt.u32.totalorder %s493_s28, %s642_s3 }
   0x5   :  { %p499_p2 = pnand %p497_p1, %p494_p0 }
   0x7   :  { %502 = shalt.err (!%p499_p2)
}
   0x8   :  { %s503_s10 = scalar_lea.vmem %s26_s25, 1024  ;;  %p508_p4 = scmp.lt.s32.totalorder %s26_s25, %s26_s25 }
   0x9   :  { %p504_p3 = scmp.ne.s32.totalorder %s26_s25, %s503_s10  ;;  %p509_p5 = scmp.lt.s32.totalorder %s503_s10, %s503_s10 }
   0xb   :  { %p510_p6 = por %p509_p5, %p508_p4 }
   0xd   :  { %p511_p7 = pnand %p510_p6, %p504_p3 }
   0xf   :  { %514 = shalt.err (!%p511_p7)
}
  0x10   :  { %s542_s11 = smov 64   ;;  %s543_s12 = smov 4  }
  0x11   :  { %31 = dma.hbm_to_vmem [thread:$0]  %s642_s3, 1024, %s26_s25, [#allocation3], %s542_s11, %s542_s11, %s543_s12  }
  0x12   :  { %s544_s15 = smov [#allocation4]   ;;  %s515_s19 = scalar_lea.hbm %s644_s5, 2048 }
  0x13   :  { %s39_s16 = sshll.u32 %s544_s15, 4  ;;  %p516_p8 = scmp.ne.s32.totalorder %s644_s5, %s515_s19  ;;  %s40_s16 = int_to_ptr.vmem [resolvable:$true] %s39_s16 }
  0x14   :  { %p519_p9 = scmp.lt.u32.totalorder %s515_s19, %s644_s5 }
  0x16   :  { %p521_p10 = pnand %p519_p9, %p516_p8 }
  0x18   :  { %524 = shalt.err (!%p521_p10)
}
  0x19   :  { %s525_s24 = scalar_lea.vmem %s40_s16, 2048  ;;  %p530_p12 = scmp.lt.s32.totalorder %s40_s16, %s40_s16 }
  0x1a   :  { %p526_p11 = scmp.ne.s32.totalorder %s40_s16, %s525_s24  ;;  %p531_p13 = scmp.lt.s32.totalorder %s525_s24, %s525_s24 }
  0x1c   :  { %p532_p0 = por %p531_p13, %p530_p12 }
  0x1e   :  { %p533_p1 = pnand %p532_p0, %p526_p11 }
  0x20   :  { %536 = shalt.err (!%p533_p1)
}
  0x21   :  { %s545_s3 = smov 128   ;;  %s546_s25 = smov 8  }
  0x22   :  { %45 = dma.hbm_to_vmem [thread:$0]  %s644_s5, 2048, %s40_s16, [#allocation5], %s545_s3, %s545_s3, %s546_s25  }
  0x23   :  { %537 = dma.done.wait [#allocation3], 1024  }
  0x24   :  { %538 = vsyncadd [#allocation3], 4294966272 }
  0x25   :  { %539 = dma.done.wait [#allocation5], 2048  }
  0x26   :  { %540 = vsyncadd [#allocation5], 4294965248  ;;  %v547_v0 = vmov 0.0   ;;  %vm548_vm0 = vmmov 0   ;;  %vm79_vm1 = vcmask 1040384   ;;  %v479_v1 = vld [vmem:[%s640_s1] sm:$0xff]  }
  0x27   :  { %382 = vmatprep.subr.bf16.mxu0 %v547_v0  ;;  %386 = vmatprep.mubr.msk.bf16.mxu0 %vm548_vm0, %v547_v0  ;;  %v549_v2 = vmov 0   ;;  %v480_v4 = vld [vmem:[%s640_s1 + $0x8] ss:$0 sps:$4 sm:$0x11]   ;;  %v481_v5 = vld [vmem:[#allocation2] sm:$0xff]   ;;  %v482_v7 = vld [vmem:[#allocation2 + $0x8] sm:$0xff]  }
  0x28   :  { %390 = vmatprep.subr.bf16.mxu1 %v547_v0  ;;  %406 = vmatprep.mubr.msk.bf16.mxu1 %vm548_vm0, %v547_v0  ;;  %v81_v3 = vsel %vm79_vm1, 65535, %v549_v2  ;;  %v55_v8 = vld [vmem:[%s639_s0] sm:$0xf]  ;;  %vm75_vm2 = vcmask 138240   ;;  %v483_v9 = vld [vmem:[#allocation2 + $0x10] sm:$0xff]   ;;  %v484_v10 = vld [vmem:[#allocation2 + $0x18] sm:$0xff]  }
  0x29   :  { %383 = vmatpush3.bf16.msra.mxu0 %v479_v1  ;;  %v83_v6 = vand.u32 %v480_v4, %v81_v3  ;;  %391 = vmatpush3.bf16.msra.mxu1 %v481_v5  ;;  %v485_v11 = vld [vmem:[#allocation2 + $0x20] sm:$0xff]   ;;  %v486_v12 = vld [vmem:[#allocation2 + $0x28] sm:$0xff]   ;;  %v487_v13 = vld [vmem:[#allocation2 + $0x30] sm:$0xff]   ;;  %v550_v18 = vmov 0.0|0.0  }
  0x2a   :  { %384 = vmatprep.subr.bf16.mxu0 %v547_v0  ;;  %392 = vmatprep.subr.bf16.mxu1 %v547_v0  ;;  %v488_v14 = vld [vmem:[#allocation2 + $0x38] sm:$0xff]   ;;  %v239_v15 = vld [vmem:[#allocation4] sm:$0xff]  ;;  %v240_v16 = vld [vmem:[#allocation4 + $0x8] sm:$0xff] }
  0x2b   :  { %v241_v17 = vld [vmem:[#allocation4 + $0x10] sm:$0xff]  ;;  %v446_v19 = vpack.c.bf16 %v240_v16, %v239_v15  ;;  %v242_v20 = vld [vmem:[#allocation4 + $0x18] sm:$0xff]  ;;  %v243_v22 = vld [vmem:[#allocation4 + $0x20] sm:$0xff] }
  0x2c   :  { %v449_v21 = vpack.c.bf16 %v242_v20, %v241_v17  ;;  %v244_v23 = vld [vmem:[#allocation4 + $0x28] sm:$0xff]  ;;  %v245_v25 = vld [vmem:[#allocation4 + $0x30] sm:$0xff]  ;;  %v246_v26 = vld [vmem:[#allocation4 + $0x38] sm:$0xff] }
  0x2d   :  { %385 = vmatpush3.bf16.msra.mxu0 %v83_v6  ;;  %393 = vmatpush3.bf16.msra.mxu1 %v482_v7  ;;  %v452_v24 = vpack.c.bf16 %v244_v23, %v243_v22  ;;  %v455_v27 = vpack.c.bf16 %v246_v26, %v245_v25  ;;  %v247_v28 = vld [vmem:[#allocation4 + $0x40] sm:$0xff]  ;;  %v248_v29 = vld [vmem:[#allocation4 + $0x48] sm:$0xff]  ;;  %v249_v39 = vld [vmem:[#allocation4 + $0x50] sm:$0xff] }
  0x2e   :  { %394 = vmatprep.subr.bf16.mxu1 %v547_v0  ;;  %445 = vmatprep.subr.bf16.mxu0 %v550_v18  ;;  %v458_v30 = vpack.c.bf16 %v248_v29, %v247_v28  ;;  %v339_v31 = vld [vmem:[%s641_s2] ss:$0 sm:$0xff]  ;;  %v250_v40 = vld [vmem:[#allocation4 + $0x58] sm:$0xff]  ;;  %v251_v42 = vld [vmem:[#allocation4 + $0x60] sm:$0xff] }
  0x2f   :  { %v461_v41 = vpack.c.bf16 %v250_v40, %v249_v39  ;;  %v252_v43 = vld [vmem:[#allocation4 + $0x68] sm:$0xff]  ;;  %v253_v45 = vld [vmem:[#allocation4 + $0x70] sm:$0xff]  ;;  %v254_v46 = vld [vmem:[#allocation4 + $0x78] sm:$0xff] }
  0x30   :  { %387 = vmatmul.mubr.msk.bf16.vlgmr.msra.gmra.mrb[0].mxu0 %vm75_vm2, %v55_v8  ;;  %v464_v44 = vpack.c.bf16 %v252_v43, %v251_v42  ;;  %v467_v47 = vpack.c.bf16 %v254_v46, %v253_v45  ;;  %v343_v48 = vld [vmem:[%s643_s4] ss:$0 sm:$0xff] }
  0x31   :  { %442 = vmatprep.mubr.msk.f32.mxu0 %vm548_vm0, %v547_v0  ;;  %395 = vmatpush3.bf16.msra.mxu1 %v483_v9  ;;  %v352_v55 = vld [vmem:[%s645_s6] ss:$0 sm:$0xff] }
  0x32   :  { %396 = vmatprep.subr.bf16.mxu1 %v547_v0  ;;  %447 = vmatpush3.bf16.msra.mxu0 %v446_v19 }
  0x33   :  { %448 = vmatprep.subr.bf16.mxu0 %v550_v18 }
  0x35   :  { %397 = vmatpush3.bf16.msra.mxu1 %v484_v10 }
  0x36   :  { %398 = vmatprep.subr.bf16.mxu1 %v547_v0  ;;  %450 = vmatpush3.bf16.msra.mxu0 %v449_v21 }
  0x37   :  { %451 = vmatprep.subr.bf16.mxu0 %v550_v18 }
  0x39   :  { %399 = vmatpush3.bf16.msra.mxu1 %v485_v11 }
  0x3a   :  { %400 = vmatprep.subr.bf16.mxu1 %v547_v0  ;;  %453 = vmatpush3.bf16.msra.mxu0 %v452_v24 }
  0x3b   :  { %454 = vmatprep.subr.bf16.mxu0 %v550_v18 }
  0x3d   :  { %401 = vmatpush3.bf16.msra.mxu1 %v486_v12 }
  0x3e   :  { %402 = vmatprep.subr.bf16.mxu1 %v547_v0  ;;  %456 = vmatpush3.bf16.msra.mxu0 %v455_v27 }
  0x3f   :  { %457 = vmatprep.subr.bf16.mxu0 %v550_v18 }
  0x41   :  { %403 = vmatpush3.bf16.msra.mxu1 %v487_v13 }
  0x42   :  { %404 = vmatprep.subr.bf16.mxu1 %v547_v0  ;;  %459 = vmatpush3.bf16.msra.mxu0 %v458_v30 }
  0x43   :  { %460 = vmatprep.subr.bf16.mxu0 %v550_v18 }
  0x45   :  { %405 = vmatpush3.bf16.msra.mxu1 %v488_v14 }
  0x46   :  { %462 = vmatpush3.bf16.msra.mxu0 %v461_v41 }
  0x47   :  { %463 = vmatprep.subr.bf16.mxu0 %v550_v18 }
  0x4a   :  { %465 = vmatpush3.bf16.msra.mxu0 %v464_v44 }
  0x4b   :  { %466 = vmatprep.subr.bf16.mxu0 %v550_v18 }
  0x4e   :  { %468 = vmatpush3.bf16.msra.mxu0 %v467_v47 }
 0x103   :  { %v119_v32 = vpop.f32.mrb[0].mxu0 }
 0x104   :  { %v120_v33 = vadd.f32 %v339_v31, %v119_v32  ;;  %v388_v34 = vpop.f32.mrb[1].mxu0 }
 0x105   :  { %v122_v35 = vpop.f32.mrb[2].mxu0 }
 0x106   :  { %489 = vtanh.f32 %v120_v33  ;;  %v389_v36 = vpop.f32.mrb[3].mxu0 }
 0x110   :  { %v490_v37 = vpop.eup %489 }
 0x111   :  { %v143_v38 = vpack.c.bf16 %v490_v37, %v490_v37 }
 0x113   :  { %407 = vmatmul.mubr.bf16.vlgmr.msra.gmra.mrb[0].mxu1 %v143_v38 }
 0x1e6   :  { %v232_v49 = vpop.f32.mrb[0].mxu1 }
 0x1e7   :  { %v233_v50 = vadd.f32 %v343_v48, %v232_v49  ;;  %v408_v51 = vpop.f32.mrb[1].mxu1 }
 0x1e8   :  { %v235_v52 = vpop.f32.mrb[2].mxu1 }
 0x1e9   :  { %491 = vtanh.f32 %v233_v50  ;;  %v409_v53 = vpop.f32.mrb[3].mxu1 }
 0x1f3   :  { %v492_v54 = vpop.eup %491 }
 0x1f4   :  { %443 = vmatmul.mubr.f32.vlgmr.msra.gmra.mrb[4].mxu0 %v492_v54 }
 0x2c7   :  { %v328_v56 = vpop.f32.mrb[4].mxu0 }
 0x2c8   :  { %v329_v57 = vadd.f32 %v352_v55, %v328_v56  ;;  %v444_v58 = vpop.f32.mrb[5].mxu0 }
 0x2ca   :  { %332 = vst [vmem:[%s646_s7] sm:$0xff] %v329_v57 }
 0x2cb   :  { %337 = vsyncpa [#allocation3], 1 }
 0x2cc   :  { %338 = vsyncpa [#allocation5], 1 }

</bundles_post_ra>
